<compile_context>
chip_gen: v5e
topology: v5e:2x2
jax: 0.10.0
libtpu: 0.0.40
codegen_flags: <defaults>
</compile_context>

<pallas_src>
import math
import numpy as np
import jax
import jax.numpy as jnp
from jax.experimental import pallas as pl
from jax.experimental.pallas import tpu as pltpu

# ---- module dims (consistent with the PyTorch __init__ asserts) ----
B = 2            # batch
T = 16           # tokens_dim (sequence length)
C = 8            # channels_dim
H_TOK = 32       # tokens_hidden_dim
H_CH = 4         # channels_hidden_dim  (< channels_dim, per ChannelMix assert)
S = 4            # sampling (in [1,2,3,4,6,8,12], per TemporalMix assert)
TP = T // S      # per-residue-class token count
SH = S * H_TOK   # fused token-mix hidden width (= 128, lane-dense)
EPS = 1e-5       # nn.LayerNorm default eps

BC = B * C       # 16 : rows of the transposed activation slab
BH = B * H_CH    # 8  : rows of the channel-mix hidden slab

# ---- static layout of the packed small-parameter slab (rows x 128 lanes, f32) ----
LANE_WC2   = BC            # rows [0,BC)      lanes [BC, BC+BH) : kron(I_B, Wc2)   (BC, BH)
LANE_GAMMA = BC + BH       # rows [0,BC)      lane  24          : gamma column     (BC, 1)
LANE_BETA  = LANE_GAMMA + 1
LANE_BC2   = LANE_BETA + 1
ROW_WC1    = BC            # rows [BC,BC+BH)  lanes [0, BC)     : kron(I_B, Wc1)   (BH, BC)
LANE_BC1   = BC            # rows [BC,BC+BH)  lane  BC          : bc1 column       (BH, 1)
ROW_BT1    = BC + BH       # row  24          lanes [0, SH)     : token-mix bias1  (1, SH)
ROW_BT2    = ROW_BT1 + 1   # row  25          lanes [0, T)      : token-mix bias2  (1, T)
SLAB_ROWS  = 32            # >= ROW_BT2+1, multiple of 8


def _erf(x):
    # Abramowitz & Stegun 7.1.26 rational approximation (max abs err ~1.5e-7).
    # PyTorch nn.GELU() default is exact (erf-based) GELU; uses only ops with guaranteed
    # Mosaic lowerings.  Plain divide kept (not pl.reciprocal(approx=True)) to preserve
    # headroom in the 1e-4 parity check; it is not on the binding slot for this kernel.
    p = 0.3275911
    a1, a2, a3, a4, a5 = 0.254829592, -0.284496736, 1.421413741, -1.453152027, 1.061405429
    sgn = jnp.where(x >= 0.0, 1.0, -1.0)
    ax = jnp.abs(x)
    t = 1.0 / (1.0 + p * ax)
    poly = ((((a5 * t + a4) * t + a3) * t + a2) * t + a1) * t
    return sgn * (1.0 - poly * jnp.exp(-ax * ax))


def _gelu_exact(x):
    return 0.5 * x * (1.0 + _erf(x * 0.7071067811865475))


def mixer_kernel(xt_ref, wt1t_ref, wt2t_ref, p_ref, o_ref):
    # xt_ref: (B*C, T) — the whole problem, per-batch transposed, resident in VMEM.
    xt = xt_ref[...]

    # Static slices of the packed parameter slab (one DMA for all small params).
    m     = p_ref[0:BC, 0:BC]                                    # (BC, BC) channel-averaging matrix
    wc2   = p_ref[0:BC, LANE_WC2:LANE_WC2 + BH]                  # (BC, BH) = kron(I_B, Wc2)
    gamma = p_ref[0:BC, LANE_GAMMA:LANE_GAMMA + 1]               # (BC, 1)
    beta  = p_ref[0:BC, LANE_BETA:LANE_BETA + 1]                 # (BC, 1)
    bc2   = p_ref[0:BC, LANE_BC2:LANE_BC2 + 1]                   # (BC, 1)
    wc1   = p_ref[ROW_WC1:ROW_WC1 + BH, 0:BC]                    # (BH, BC) = kron(I_B, Wc1)
    bc1   = p_ref[ROW_WC1:ROW_WC1 + BH, LANE_BC1:LANE_BC1 + 1]   # (BH, 1)
    bt1   = p_ref[ROW_BT1:ROW_BT1 + 1, 0:SH]                     # (1, SH) dense row
    bt2   = p_ref[ROW_BT2:ROW_BT2 + 1, 0:T]                      # (1, T)  dense row

    def layernorm_t(v):
        # LayerNorm over channels (= per-batch row groups in this layout), realized as two
        # tiny matmuls with the averaging matrix so every op stays a dense 2D matmul /
        # elementwise op (no cross-sublane reductions, no in-kernel transposes).
        mu = jnp.dot(m, v, preferred_element_type=jnp.float32)           # (BC, T), pre-broadcast
        xc = v - mu
        var = jnp.dot(m, xc * xc, preferred_element_type=jnp.float32)
        return xc * jax.lax.rsqrt(var + EPS) * gamma + beta

    # ---- tokens_mixing = TemporalMix on norm(x), lane-dense orientation ----
    yn = layernorm_t(xt)                                                          # (BC, T)
    h = jnp.dot(yn, wt1t_ref[...], preferred_element_type=jnp.float32) + bt1      # (BC, SH) = (16,128)
    h = _gelu_exact(h)
    # TODO(synk): nn.Dropout(p=0.05) inside both MLPBlocks omitted — inference semantics (identity).
    y_tok = jnp.dot(h, wt2t_ref[...], preferred_element_type=jnp.float32) + bt2   # (BC, T)

    # ---- residual + channels_mixing = ChannelMix on norm(res) ----
    y1 = y_tok + xt                                    # y += x ; res = y   (transposed coords)
    yn1 = layernorm_t(y1)
    h2 = jnp.dot(wc1, yn1, preferred_element_type=jnp.float32) + bc1              # (BH, T)
    h2 = _gelu_exact(h2)
    y2 = jnp.dot(wc2, h2, preferred_element_type=jnp.float32) + bc2               # (BC, T)

    o_ref[...] = (y1 + y2).astype(o_ref.dtype)         # res + channels_mixing(norm(res))


def prepare_params(params):
    """One-time host-side weight packing (outside the per-call forward path)."""
    p = {k: np.asarray(v, np.float32) for k, v in params.items()}

    # Token-mix weights in the transposed (lane-dense) orientation, shared across batch.
    # Class s occupies hidden columns [s*H, (s+1)*H) and token rows/cols s::S.
    wt1t = np.zeros((T, SH), np.float32)      # yn (BC,T) @ wt1t -> h (BC, SH)
    wt2t = np.zeros((SH, T), np.float32)      # h (BC,SH) @ wt2t -> y_tok (BC, T)
    bt1 = p["b1"].reshape(SH)
    bt2 = np.zeros((T,), np.float32)
    for s in range(S):
        wt1t[s::S, s * H_TOK:(s + 1) * H_TOK] = p["W1"][s].T     # (TP, H_TOK)
        wt2t[s * H_TOK:(s + 1) * H_TOK, s::S] = p["W2"][s].T     # (H_TOK, TP)
        bt2[s::S] = p["b2"][s]

    # Packed small-parameter slab (single DMA).
    eye_b = np.eye(B, dtype=np.float32)
    slab = np.zeros((SLAB_ROWS, 128), np.float32)
    slab[0:BC, 0:BC] = np.kron(eye_b, np.full((C, C), 1.0 / C, np.float32))  # LayerNorm mean matrix
    slab[0:BC, LANE_WC2:LANE_WC2 + BH] = np.kron(eye_b, p["Wc2"])            # (BC, BH)
    slab[0:BC, LANE_GAMMA] = np.tile(p["gamma"], B)
    slab[0:BC, LANE_BETA] = np.tile(p["beta"], B)
    slab[0:BC, LANE_BC2] = np.tile(p["bc2"], B)
    slab[ROW_WC1:ROW_WC1 + BH, 0:BC] = np.kron(eye_b, p["Wc1"])              # (BH, BC)
    slab[ROW_WC1:ROW_WC1 + BH, LANE_BC1] = np.tile(p["bc1"], B)
    slab[ROW_BT1, 0:SH] = bt1
    slab[ROW_BT2, 0:T] = bt2

    return {"wt1t": jnp.asarray(wt1t), "wt2t": jnp.asarray(wt2t), "slab": jnp.asarray(slab)}


@jax.jit
def mixer_block_forward(x, wt1t, wt2t, slab):
    # Wrapper-side layout plumbing: (B, T, C) -> per-batch transpose -> (B*C, T).
    xt2 = jnp.transpose(x, (0, 2, 1)).reshape(BC, T)
    vmem = pl.BlockSpec(memory_space=pltpu.MemorySpace.VMEM)     # whole-array, no grid, no pipelining
    yt2 = pl.pallas_call(
        mixer_kernel,
        out_shape=jax.ShapeDtypeStruct((BC, T), jnp.float32),
        in_specs=[vmem, vmem, vmem, vmem],
        out_specs=vmem,
    )(xt2, wt1t, wt2t, slab)
    return jnp.transpose(yt2.reshape(B, C, T), (0, 2, 1))        # back to (B, T, C)


# ---- exact float64 NumPy reference mirroring the PyTorch forward ----
def ref_forward_np(x, params):
    x = np.asarray(x, np.float64)
    pr = {k: np.asarray(v, np.float64) for k, v in params.items()}
    erf = np.vectorize(math.erf)

    def ln(v):
        mu = v.mean(-1, keepdims=True)
        var = ((v - mu) ** 2).mean(-1, keepdims=True)
        return (v - mu) / np.sqrt(var + EPS) * pr["gamma"] + pr["beta"]

    def gelu(v):
        return 0.5 * v * (1.0 + erf(v / math.sqrt(2.0)))

    y = ln(x)
    yt = np.swapaxes(y, 1, 2)                     # transpose(1, 2): (B, C, T)
    out = np.zeros_like(yt)
    for s in range(S):
        xs = yt[:, :, s::S]                       # (B, C, TP)
        h = gelu(xs @ pr["W1"][s].T + pr["b1"][s])
        out[:, :, s::S] = h @ pr["W2"][s].T + pr["b2"][s]   # merge()
    y = np.swapaxes(out, 1, 2) + x                # y += x
    res = y
    yn = ln(y)
    h = gelu(yn @ pr["Wc1"].T + pr["bc1"])
    return res + (h @ pr["Wc2"].T + pr["bc2"])


if __name__ == "__main__":
    key = jax.random.PRNGKey(0)
    ks = jax.random.split(key, 11)
    params = {
        "gamma": 1.0 + 0.1 * jax.random.normal(ks[0], (C,), jnp.float32),
        "beta": 0.1 * jax.random.normal(ks[1], (C,), jnp.float32),
        "W1": 0.3 * jax.random.normal(ks[2], (S, H_TOK, TP), jnp.float32),
        "b1": 0.1 * jax.random.normal(ks[3], (S, H_TOK), jnp.float32),
        "W2": 0.3 * jax.random.normal(ks[4], (S, TP, H_TOK), jnp.float32),
        "b2": 0.1 * jax.random.normal(ks[5], (S, TP), jnp.float32),
        "Wc1": 0.3 * jax.random.normal(ks[6], (H_CH, C), jnp.float32),
        "bc1": 0.1 * jax.random.normal(ks[7], (H_CH,), jnp.float32),
        "Wc2": 0.3 * jax.random.normal(ks[8], (C, H_CH), jnp.float32),
        "bc2": 0.1 * jax.random.normal(ks[9], (C,), jnp.float32),
    }
    x = jax.random.normal(ks[10], (B, T, C), jnp.float32)

    prep = prepare_params(params)                 # one-time weight scatter / slab packing

    y = jax.block_until_ready(mixer_block_forward(x, prep["wt1t"], prep["wt2t"], prep["slab"]))
    assert y.shape == (B, T, C)

    y_np = np.asarray(y, np.float64)
    y_ref = ref_forward_np(np.asarray(x), {k: np.asarray(v) for k, v in params.items()})
    err = float(np.max(np.abs(y_np - y_ref)))
    if not np.allclose(y_np, y_ref, atol=1e-4, rtol=1e-4):
        raise AssertionError(f"mismatch vs reference, max abs err = {err}")
    print("KERNEL_OK")
</pallas_src>

<mosaic_0001>
module attributes {stable_mosaic.version = 11 : i64} {
  func.func @mixer_kernel(%arg0: memref<16x16xf32, #tpu.memory_space<vmem>>, %arg1: memref<16x128xf32, #tpu.memory_space<vmem>>, %arg2: memref<128x16xf32, #tpu.memory_space<vmem>>, %arg3: memref<32x128xf32, #tpu.memory_space<vmem>>, %arg4: memref<16x16xf32, #tpu.memory_space<vmem>>) attributes {dimension_semantics = [], scalar_prefetch = 0 : i64, scratch_operands = 0 : i64, tpu.core_type = #tpu.core_type<tc>} {
    %c0 = arith.constant 0 : index
    %c0_0 = arith.constant 0 : index
    %0 = vector.load %arg0[%c0, %c0_0] : memref<16x16xf32, #tpu.memory_space<vmem>>, vector<16x16xf32>
    %c0_1 = arith.constant 0 : index
    %c0_2 = arith.constant 0 : index
    %1 = vector.load %arg3[%c0_1, %c0_2] : memref<32x128xf32, #tpu.memory_space<vmem>>, vector<16x16xf32>
    %c0_3 = arith.constant 0 : index
    %c16 = arith.constant 16 : index
    %2 = vector.load %arg3[%c0_3, %c16] : memref<32x128xf32, #tpu.memory_space<vmem>>, vector<16x8xf32>
    %c0_4 = arith.constant 0 : index
    %c24 = arith.constant 24 : index
    %3 = vector.load %arg3[%c0_4, %c24] : memref<32x128xf32, #tpu.memory_space<vmem>>, vector<16x1xf32>
    %c0_5 = arith.constant 0 : index
    %c25 = arith.constant 25 : index
    %4 = vector.load %arg3[%c0_5, %c25] : memref<32x128xf32, #tpu.memory_space<vmem>>, vector<16x1xf32>
    %c0_6 = arith.constant 0 : index
    %c26 = arith.constant 26 : index
    %5 = vector.load %arg3[%c0_6, %c26] : memref<32x128xf32, #tpu.memory_space<vmem>>, vector<16x1xf32>
    %c16_7 = arith.constant 16 : index
    %c0_8 = arith.constant 0 : index
    %6 = vector.load %arg3[%c16_7, %c0_8] : memref<32x128xf32, #tpu.memory_space<vmem>>, vector<8x16xf32>
    %c16_9 = arith.constant 16 : index
    %c16_10 = arith.constant 16 : index
    %7 = vector.load %arg3[%c16_9, %c16_10] : memref<32x128xf32, #tpu.memory_space<vmem>>, vector<8x1xf32>
    %c24_11 = arith.constant 24 : index
    %c0_12 = arith.constant 0 : index
    %8 = vector.load %arg3[%c24_11, %c0_12] : memref<32x128xf32, #tpu.memory_space<vmem>>, vector<1x128xf32>
    %c25_13 = arith.constant 25 : index
    %c0_14 = arith.constant 0 : index
    %9 = vector.load %arg3[%c25_13, %c0_14] : memref<32x128xf32, #tpu.memory_space<vmem>>, vector<1x16xf32>
    %cst = arith.constant dense<0.000000e+00> : vector<16x16xf32>
    %10 = tpu.matmul %1, %0, %cst {dimension_numbers = #tpu.dot_dimension_numbers<[1], [0], [0], [1], [0, 0, 1, 1], [], []>} : vector<16x16xf32>, vector<16x16xf32>, vector<16x16xf32> -> vector<16x16xf32>
    %11 = arith.subf %0, %10 : vector<16x16xf32>
    %12 = arith.mulf %11, %11 : vector<16x16xf32>
    %cst_15 = arith.constant dense<0.000000e+00> : vector<16x16xf32>
    %13 = tpu.matmul %1, %12, %cst_15 {dimension_numbers = #tpu.dot_dimension_numbers<[1], [0], [0], [1], [0, 0, 1, 1], [], []>} : vector<16x16xf32>, vector<16x16xf32>, vector<16x16xf32> -> vector<16x16xf32>
    %cst_16 = arith.constant 9.99999974E-6 : f32
    %14 = vector.broadcast %cst_16 : f32 to vector<16x16xf32>
    %15 = arith.addf %13, %14 : vector<16x16xf32>
    %16 = math.rsqrt %15 : vector<16x16xf32>
    %17 = arith.mulf %11, %16 : vector<16x16xf32>
    %18 = vector.broadcast %3 : vector<16x1xf32> to vector<16x16xf32>
    %19 = arith.mulf %17, %18 : vector<16x16xf32>
    %20 = vector.broadcast %4 : vector<16x1xf32> to vector<16x16xf32>
    %21 = arith.addf %19, %20 : vector<16x16xf32>
    %c0_17 = arith.constant 0 : index
    %c0_18 = arith.constant 0 : index
    %22 = vector.load %arg1[%c0_17, %c0_18] : memref<16x128xf32, #tpu.memory_space<vmem>>, vector<16x128xf32>
    %cst_19 = arith.constant dense<0.000000e+00> : vector<16x128xf32>
    %23 = tpu.matmul %21, %22, %cst_19 {dimension_numbers = #tpu.dot_dimension_numbers<[1], [0], [0], [1], [0, 0, 1, 1], [], []>} : vector<16x16xf32>, vector<16x128xf32>, vector<16x128xf32> -> vector<16x128xf32>
    %24 = vector.broadcast %8 : vector<1x128xf32> to vector<16x128xf32>
    %25 = arith.addf %23, %24 : vector<16x128xf32>
    %cst_20 = arith.constant 5.000000e-01 : f32
    %26 = vector.broadcast %cst_20 : f32 to vector<16x128xf32>
    %27 = arith.mulf %26, %25 : vector<16x128xf32>
    %cst_21 = arith.constant 0.707106769 : f32
    %28 = vector.broadcast %cst_21 : f32 to vector<16x128xf32>
    %29 = arith.mulf %25, %28 : vector<16x128xf32>
    %cst_22 = arith.constant 0.000000e+00 : f32
    %30 = vector.broadcast %cst_22 : f32 to vector<16x128xf32>
    %31 = arith.cmpf oge, %29, %30 : vector<16x128xf32>
    %cst_23 = arith.constant 1.000000e+00 : f32
    %cst_24 = arith.constant -1.000000e+00 : f32
    %32 = vector.broadcast %cst_23 : f32 to vector<16x128xf32>
    %33 = vector.broadcast %cst_24 : f32 to vector<16x128xf32>
    %34 = arith.select %31, %32, %33 : vector<16x128xi1>, vector<16x128xf32>
    %35 = math.absf %29 : vector<16x128xf32>
    %cst_25 = arith.constant 0.327591091 : f32
    %36 = vector.broadcast %cst_25 : f32 to vector<16x128xf32>
    %37 = arith.mulf %36, %35 : vector<16x128xf32>
    %cst_26 = arith.constant 1.000000e+00 : f32
    %38 = vector.broadcast %cst_26 : f32 to vector<16x128xf32>
    %39 = arith.addf %38, %37 : vector<16x128xf32>
    %cst_27 = arith.constant 1.000000e+00 : f32
    %40 = vector.broadcast %cst_27 : f32 to vector<16x128xf32>
    %41 = arith.divf %40, %39 : vector<16x128xf32>
    %cst_28 = arith.constant 1.06140542 : f32
    %42 = vector.broadcast %cst_28 : f32 to vector<16x128xf32>
    %43 = arith.mulf %42, %41 : vector<16x128xf32>
    %cst_29 = arith.constant -1.45315206 : f32
    %44 = vector.broadcast %cst_29 : f32 to vector<16x128xf32>
    %45 = arith.addf %43, %44 : vector<16x128xf32>
    %46 = arith.mulf %45, %41 : vector<16x128xf32>
    %cst_30 = arith.constant 1.42141378 : f32
    %47 = vector.broadcast %cst_30 : f32 to vector<16x128xf32>
    %48 = arith.addf %46, %47 : vector<16x128xf32>
    %49 = arith.mulf %48, %41 : vector<16x128xf32>
    %cst_31 = arith.constant -0.284496725 : f32
    %50 = vector.broadcast %cst_31 : f32 to vector<16x128xf32>
    %51 = arith.addf %49, %50 : vector<16x128xf32>
    %52 = arith.mulf %51, %41 : vector<16x128xf32>
    %cst_32 = arith.constant 0.254829586 : f32
    %53 = vector.broadcast %cst_32 : f32 to vector<16x128xf32>
    %54 = arith.addf %52, %53 : vector<16x128xf32>
    %55 = arith.mulf %54, %41 : vector<16x128xf32>
    %cst_33 = arith.constant 0.000000e+00 : f32
    %56 = vector.broadcast %cst_33 : f32 to vector<16x128xf32>
    %57 = arith.subf %56, %35 : vector<16x128xf32>
    %58 = arith.mulf %57, %35 : vector<16x128xf32>
    %59 = math.exp %58 : vector<16x128xf32>
    %60 = arith.mulf %55, %59 : vector<16x128xf32>
    %cst_34 = arith.constant 1.000000e+00 : f32
    %61 = vector.broadcast %cst_34 : f32 to vector<16x128xf32>
    %62 = arith.subf %61, %60 : vector<16x128xf32>
    %63 = arith.mulf %34, %62 : vector<16x128xf32>
    %cst_35 = arith.constant 1.000000e+00 : f32
    %64 = vector.broadcast %cst_35 : f32 to vector<16x128xf32>
    %65 = arith.addf %64, %63 : vector<16x128xf32>
    %66 = arith.mulf %27, %65 : vector<16x128xf32>
    %c0_36 = arith.constant 0 : index
    %c0_37 = arith.constant 0 : index
    %67 = vector.load %arg2[%c0_36, %c0_37] : memref<128x16xf32, #tpu.memory_space<vmem>>, vector<128x16xf32>
    %cst_38 = arith.constant dense<0.000000e+00> : vector<16x16xf32>
    %68 = tpu.matmul %66, %67, %cst_38 {dimension_numbers = #tpu.dot_dimension_numbers<[1], [0], [0], [1], [0, 0, 1, 1], [], []>} : vector<16x128xf32>, vector<128x16xf32>, vector<16x16xf32> -> vector<16x16xf32>
    %69 = vector.broadcast %9 : vector<1x16xf32> to vector<16x16xf32>
    %70 = arith.addf %68, %69 : vector<16x16xf32>
    %71 = arith.addf %70, %0 : vector<16x16xf32>
    %cst_39 = arith.constant dense<0.000000e+00> : vector<16x16xf32>
    %72 = tpu.matmul %1, %71, %cst_39 {dimension_numbers = #tpu.dot_dimension_numbers<[1], [0], [0], [1], [0, 0, 1, 1], [], []>} : vector<16x16xf32>, vector<16x16xf32>, vector<16x16xf32> -> vector<16x16xf32>
    %73 = arith.subf %71, %72 : vector<16x16xf32>
    %74 = arith.mulf %73, %73 : vector<16x16xf32>
    %cst_40 = arith.constant dense<0.000000e+00> : vector<16x16xf32>
    %75 = tpu.matmul %1, %74, %cst_40 {dimension_numbers = #tpu.dot_dimension_numbers<[1], [0], [0], [1], [0, 0, 1, 1], [], []>} : vector<16x16xf32>, vector<16x16xf32>, vector<16x16xf32> -> vector<16x16xf32>
    %cst_41 = arith.constant 9.99999974E-6 : f32
    %76 = vector.broadcast %cst_41 : f32 to vector<16x16xf32>
    %77 = arith.addf %75, %76 : vector<16x16xf32>
    %78 = math.rsqrt %77 : vector<16x16xf32>
    %79 = arith.mulf %73, %78 : vector<16x16xf32>
    %80 = vector.broadcast %3 : vector<16x1xf32> to vector<16x16xf32>
    %81 = arith.mulf %79, %80 : vector<16x16xf32>
    %82 = vector.broadcast %4 : vector<16x1xf32> to vector<16x16xf32>
    %83 = arith.addf %81, %82 : vector<16x16xf32>
    %cst_42 = arith.constant dense<0.000000e+00> : vector<8x16xf32>
    %84 = tpu.matmul %6, %83, %cst_42 {dimension_numbers = #tpu.dot_dimension_numbers<[1], [0], [0], [1], [0, 0, 1, 1], [], []>} : vector<8x16xf32>, vector<16x16xf32>, vector<8x16xf32> -> vector<8x16xf32>
    %85 = vector.broadcast %7 : vector<8x1xf32> to vector<8x16xf32>
    %86 = arith.addf %84, %85 : vector<8x16xf32>
    %cst_43 = arith.constant 5.000000e-01 : f32
    %87 = vector.broadcast %cst_43 : f32 to vector<8x16xf32>
    %88 = arith.mulf %87, %86 : vector<8x16xf32>
    %cst_44 = arith.constant 0.707106769 : f32
    %89 = vector.broadcast %cst_44 : f32 to vector<8x16xf32>
    %90 = arith.mulf %86, %89 : vector<8x16xf32>
    %cst_45 = arith.constant 0.000000e+00 : f32
    %91 = vector.broadcast %cst_45 : f32 to vector<8x16xf32>
    %92 = arith.cmpf oge, %90, %91 : vector<8x16xf32>
    %cst_46 = arith.constant 1.000000e+00 : f32
    %cst_47 = arith.constant -1.000000e+00 : f32
    %93 = vector.broadcast %cst_46 : f32 to vector<8x16xf32>
    %94 = vector.broadcast %cst_47 : f32 to vector<8x16xf32>
    %95 = arith.select %92, %93, %94 : vector<8x16xi1>, vector<8x16xf32>
    %96 = math.absf %90 : vector<8x16xf32>
    %cst_48 = arith.constant 0.327591091 : f32
    %97 = vector.broadcast %cst_48 : f32 to vector<8x16xf32>
    %98 = arith.mulf %97, %96 : vector<8x16xf32>
    %cst_49 = arith.constant 1.000000e+00 : f32
    %99 = vector.broadcast %cst_49 : f32 to vector<8x16xf32>
    %100 = arith.addf %99, %98 : vector<8x16xf32>
    %cst_50 = arith.constant 1.000000e+00 : f32
    %101 = vector.broadcast %cst_50 : f32 to vector<8x16xf32>
    %102 = arith.divf %101, %100 : vector<8x16xf32>
    %cst_51 = arith.constant 1.06140542 : f32
    %103 = vector.broadcast %cst_51 : f32 to vector<8x16xf32>
    %104 = arith.mulf %103, %102 : vector<8x16xf32>
    %cst_52 = arith.constant -1.45315206 : f32
    %105 = vector.broadcast %cst_52 : f32 to vector<8x16xf32>
    %106 = arith.addf %104, %105 : vector<8x16xf32>
    %107 = arith.mulf %106, %102 : vector<8x16xf32>
    %cst_53 = arith.constant 1.42141378 : f32
    %108 = vector.broadcast %cst_53 : f32 to vector<8x16xf32>
    %109 = arith.addf %107, %108 : vector<8x16xf32>
    %110 = arith.mulf %109, %102 : vector<8x16xf32>
    %cst_54 = arith.constant -0.284496725 : f32
    %111 = vector.broadcast %cst_54 : f32 to vector<8x16xf32>
    %112 = arith.addf %110, %111 : vector<8x16xf32>
    %113 = arith.mulf %112, %102 : vector<8x16xf32>
    %cst_55 = arith.constant 0.254829586 : f32
    %114 = vector.broadcast %cst_55 : f32 to vector<8x16xf32>
    %115 = arith.addf %113, %114 : vector<8x16xf32>
    %116 = arith.mulf %115, %102 : vector<8x16xf32>
    %cst_56 = arith.constant 0.000000e+00 : f32
    %117 = vector.broadcast %cst_56 : f32 to vector<8x16xf32>
    %118 = arith.subf %117, %96 : vector<8x16xf32>
    %119 = arith.mulf %118, %96 : vector<8x16xf32>
    %120 = math.exp %119 : vector<8x16xf32>
    %121 = arith.mulf %116, %120 : vector<8x16xf32>
    %cst_57 = arith.constant 1.000000e+00 : f32
    %122 = vector.broadcast %cst_57 : f32 to vector<8x16xf32>
    %123 = arith.subf %122, %121 : vector<8x16xf32>
    %124 = arith.mulf %95, %123 : vector<8x16xf32>
    %cst_58 = arith.constant 1.000000e+00 : f32
    %125 = vector.broadcast %cst_58 : f32 to vector<8x16xf32>
    %126 = arith.addf %125, %124 : vector<8x16xf32>
    %127 = arith.mulf %88, %126 : vector<8x16xf32>
    %cst_59 = arith.constant dense<0.000000e+00> : vector<16x16xf32>
    %128 = tpu.matmul %2, %127, %cst_59 {dimension_numbers = #tpu.dot_dimension_numbers<[1], [0], [0], [1], [0, 0, 1, 1], [], []>} : vector<16x8xf32>, vector<8x16xf32>, vector<16x16xf32> -> vector<16x16xf32>
    %129 = vector.broadcast %5 : vector<16x1xf32> to vector<16x16xf32>
    %130 = arith.addf %128, %129 : vector<16x16xf32>
    %131 = arith.addf %71, %130 : vector<16x16xf32>
    %c0_60 = arith.constant 0 : index
    %c0_61 = arith.constant 0 : index
    %132 = vector.load %arg4[%c0_60, %c0_61] : memref<16x16xf32, #tpu.memory_space<vmem>>, vector<16x16xf32>
    tpu.vector_store %arg4[%c0_60, %c0_61], %131 {strides = array<i32>} : memref<16x16xf32, #tpu.memory_space<vmem>>, vector<16x16xf32>,
    return
  }
}

</mosaic_0001>

<bundles_post_ra>
// kernel: mixer_block_forward.1
= control target key start
LH: loop header
LB: loop body
LE: loop exit
PB: predicated region body
PF: predicated region fallthrough
CT: control target
= control target key end

     0   :  { %vm25_vm0 = vcmask 130048   ;;  %s760_s0 = inlined_call_operand.vmem [shape: f32[16,16], index: 0, kind: input, shape index: {}]   ;;  %s761_s1 = inlined_call_operand.vmem [shape: f32[16,128], index: 1, kind: input, shape index: {}]   ;;  %s762_s2 = inlined_call_operand.vmem [shape: f32[128,16], index: 2, kind: input, shape index: {}]   ;;  %s763_s3 = inlined_call_operand.vmem [shape: f32[32,128], index: 3, kind: input, shape index: {}]   ;;  %s764_s4 = inlined_call_operand.hbm [shape: f32[16,16], index: 4, kind: output, shape index: {}]  }
   0x1   :  { %v597_v0 = vld [vmem:[%s760_s0 + $0x8] sm:$0xff]  ;;  %v602_v1 = vld [vmem:[%s760_s0] sm:$0xff] }
   0x2   :  { %46 = vmatpush.msra.mxu0 %v597_v0  ;;  %v608_v2 = vld [vmem:[%s763_s3] sm:$0xff] }
   0x3   :  { %9 = vsyncpa [#allocation3], 0  ;;  %v616_v3 = vld [vmem:[%s763_s3 + $0x8] sm:$0xff]  ;;  %v560_v4 = vmov 24   ;;  %v561_v6 = vmov 25   ;;  %v124_v13 = vld [vmem:[%s761_s1] sm:$0xff] }
   0x4   :  { %47 = vmatpush.msra.mxu0 %v602_v1  ;;  %505 = vset.pattern.permute.xlu0 %v560_v4  ;;  %v125_v12 = vld [vmem:[%s761_s1 + $0x8] sm:$0xff]  ;;  %v251_v42 = vld [vmem:[%s762_s2 + $0x78] sm:$0xff]  ;;  %v250_v43 = vld [vmem:[%s762_s2 + $0x70] sm:$0xff]  ;;  %s563_s6 = smov 112   ;;  %s471_s12 = sshll.u32 %s764_s4, 4  ;;  %s472_s12 = int_to_ptr.hbm [resolvable:$true] %s471_s12 }
   0x5   :  { %483 = vmatmul.msk.f32.vlgmr.msra.gmra.mxu0 %vm25_vm0, %v608_v2  ;;  %507 = vset.pattern.permute.xlu1 %v560_v4  ;;  %v249_v44 = vld [vmem:[%s762_s2 + $0x68] sm:$0xff]  ;;  %v248_v45 = vld [vmem:[%s762_s2 + $0x60] sm:$0xff]  ;;  %v512_v46 = vld [vmem:[%s763_s3 + $0x18] ss:$0 sm:$0xff]  ;;  %s567_s13 = smov 128   ;;  %s568_s14 = smov 8  }
   0x6   :  { %105 = vperm.xlu0 %505, %v608_v2   ;;  %109 = vperm.xlu1 %507, %v616_v3   ;;  %v247_v47 = vld [vmem:[%s762_s2 + $0x58] sm:$0xff]  ;;  %v246_v49 = vld [vmem:[%s762_s2 + $0x50] sm:$0xff]  ;;  %v245_v51 = vld [vmem:[%s762_s2 + $0x48] sm:$0xff] }
   0x7   :  { %147 = vmatpush.msra.mxu2 %v125_v12  ;;  %253 = vmatpush.msra.mxu3 %v251_v42  ;;  %v244_v53 = vld [vmem:[%s762_s2 + $0x40] sm:$0xff]  ;;  %v243_v55 = vld [vmem:[%s762_s2 + $0x38] sm:$0xff]  ;;  %v242_v58 = vld [vmem:[%s762_s2 + $0x30] sm:$0xff] }
   0x8   :  { %v241_v61 = vld [vmem:[%s762_s2 + $0x28] sm:$0xff]  ;;  %v240_v63 = vld [vmem:[%s762_s2 + $0x20] sm:$0xff] }
   0x9   :  { %148 = vmatpush.msra.mxu2 %v124_v13  ;;  %254 = vmatpush.msra.mxu3 %v250_v43  ;;  %v236_v13 = vld [vmem:[%s762_s2] sm:$0xff] }
   0xb   :  { %255 = vmatpush.msra.mxu3 %v249_v44 }
   0xd   :  { %484 = vmatmul.msk.f32.gmra.mxu0 %vm25_vm0, %v616_v3  ;;  %256 = vmatpush.msra.mxu3 %v248_v45 }
   0xe   :  { %506 = vset.pattern.permute.xlu0 %v561_v6  ;;  %508 = vset.pattern.permute.xlu1 %v561_v6 }
   0xf   :  { %115 = vperm.xlu0 %506, %v608_v2   ;;  %119 = vperm.xlu1 %508, %v616_v3  }
  0x10   :  { %257 = vmatpush.msra.mxu3 %v247_v47 }
  0x12   :  { %258 = vmatpush.msra.mxu3 %v246_v49 }
  0x14   :  { %259 = vmatpush.msra.mxu3 %v245_v51 }
  0x16   :  { %260 = vmatpush.msra.mxu3 %v244_v53 }
  0x17   :  { %431 = vrot.lane.b32.xlu1 %v616_v3, %s563_s6 }
  0x18   :  { %261 = vmatpush.msra.mxu3 %v243_v55 }
  0x1a   :  { %262 = vmatpush.msra.mxu3 %v242_v58 }
  0x1c   :  { %263 = vmatpush.msra.mxu3 %v241_v61 }
  0x1e   :  { %264 = vmatpush.msra.mxu3 %v240_v63 }
  0x78   :  { %v636_v21 = vpop.permute.xlu0 %105  ;;  %v638_v29 = vpop.permute.xlu1 %109 }
  0x81   :  { %v640_v32 = vpop.permute.xlu0 %115  ;;  %v645_v39 = vpop.permute.xlu1 %119 }
  0x82   :  { %v49_v5 = vpop.f32.mrf.mxu0 }
  0x83   :  { %v55_v8 = vsub.f32 %v602_v1, %v49_v5  ;;  %v239_v5 = vld [vmem:[%s762_s2 + $0x18] sm:$0xff] }
  0x84   :  { %265 = vmatpush.msra.mxu3 %v239_v5  ;;  %v562_v5 = vmov -1.0  }
  0x85   :  { %v57_v11 = vmul.f32 %v55_v8, %v55_v8 }
  0x8a   :  { %v52_v7 = vpop.f32.mrf.mxu0 }
  0x8b   :  { %v56_v9 = vsub.f32 %v597_v0, %v52_v7  ;;  %v238_v7 = vld [vmem:[%s762_s2 + $0x10] sm:$0xff] }
  0x8c   :  { %266 = vmatpush.msra.mxu3 %v238_v7 }
  0x8d   :  { %v58_v10 = vmul.f32 %v56_v9, %v56_v9 }
  0x8f   :  { %73 = vmatpush.msra.mxu1 %v58_v10 }
  0x91   :  { %74 = vmatpush.msra.mxu1 %v57_v11  ;;  %v237_v11 = vld [vmem:[%s762_s2 + $0x8] sm:$0xff] }
  0x92   :  { %485 = vmatmul.msk.f32.vlgmr.msra.gmra.mxu1 %vm25_vm0, %v608_v2  ;;  %267 = vmatpush.msra.mxu3 %v237_v11 }
  0x94   :  { %268 = vmatpush.msra.mxu3 %v236_v13 }
  0x9a   :  { %486 = vmatmul.msk.f32.gmra.mxu1 %vm25_vm0, %v616_v3 }
 0x10f   :  { %v76_v14 = vpop.f32.mrf.mxu1 }
 0x110   :  { %v77_v15 = vadd.f32 1e-05, %v76_v14 }
 0x112   :  { %514 = vrsqrt.f32 %v77_v15  ;;  %vm88_vm2 = vweird.f32 %v77_v15 }
 0x117   :  { %v79_v16 = vpop.f32.mrf.mxu1 }
 0x118   :  { %v515_v17 = vpop.eup %514  ;;  %v80_v18 = vadd.f32 1e-05, %v79_v16 }
 0x119   :  { %v83_v19 = vmul.f32 %v515_v17, %v77_v15  ;;  %vm89_vm1 = vweird.f32 %v515_v17 }
 0x11a   :  { %516 = vrsqrt.f32 %v80_v18  ;;  %vm90_vm3 = vmor %vm88_vm2, %vm89_vm1  ;;  %vm98_vm5 = vweird.f32 %v80_v18 }
 0x11b   :  { %v84_v20 = vmul.f32 %v515_v17, %v83_v19 }
 0x11d   :  { %v85_v22 = vmul.f32 0.5, %v84_v20 }
 0x11f   :  { %v86_v23 = vsub.f32 1.5, %v85_v22 }
 0x120   :  { %v517_v24 = vpop.eup %516 }
 0x121   :  { %v93_v25 = vmul.f32 %v517_v24, %v80_v18  ;;  %v87_v26 = vmul.f32 %v515_v17, %v86_v23  ;;  %vm99_vm4 = vweird.f32 %v517_v24 }
 0x122   :  { %vm100_vm6 = vmor %vm98_vm5, %vm99_vm4 }
 0x123   :  { %v94_v27 = vmul.f32 %v517_v24, %v93_v25  ;;  %v91_v28 = vsel %vm90_vm3, %v515_v17, %v87_v26 }
 0x124   :  { %v102_v30 = vmul.f32 %v91_v28, %v55_v8 }
 0x125   :  { %v95_v31 = vmul.f32 0.5, %v94_v27 }
 0x126   :  { %v112_v33 = vmul.f32 %v636_v21, %v102_v30 }
 0x127   :  { %v96_v34 = vsub.f32 1.5, %v95_v31 }
 0x128   :  { %v122_v35 = vadd.f32 %v640_v32, %v112_v33 }
 0x129   :  { %v97_v36 = vmul.f32 %v517_v24, %v96_v34 }
 0x12a   :  { %487 = vmatmul.msk.f32.vlgmr.msra.gmra.mxu2 %vm25_vm0, %v122_v35 }
 0x12b   :  { %v101_v37 = vsel %vm100_vm6, %v517_v24, %v97_v36 }
 0x12c   :  { %v103_v38 = vmul.f32 %v101_v37, %v56_v9 }
 0x12e   :  { %v113_v40 = vmul.f32 %v638_v29, %v103_v38 }
 0x130   :  { %v123_v41 = vadd.f32 %v645_v39, %v113_v40 }
 0x132   :  { %488 = vmatmul.msk.f32.gmra.mxu2 %vm25_vm0, %v123_v41 }
 0x1ad   :  { %v150_v48 = vpop.f32.mrf.mxu2 }
 0x1ae   :  { %v671_v50 = vadd.f32 %v512_v46, %v150_v48 }
 0x1b0   :  { %v677_v52 = vmul.f32 0.70710677, %v671_v50 }
 0x1b2   :  { %v164_v54 = vand.u32 2147483647, %v677_v52  ;;  %vm160_vm15 = vcmp.ge.f32.partialorder %v677_v52, 0.0 }
 0x1b4   :  { %v166_v56 = vmul.f32 0.3275911, %v164_v54  ;;  %v218_v23 = vsub.f32 0.0, %v164_v54 }
 0x1b5   :  { %v153_v57 = vpop.f32.mrf.mxu2 }
 0x1b6   :  { %v168_v59 = vadd.f32 1.0, %v166_v56  ;;  %v689_v60 = vadd.f32 %v512_v46, %v153_v57  ;;  %v220_v33 = vmul.f32 %v218_v23, %v164_v54 }
 0x1b8   :  { %518 = vrcp.f32 %v168_v59  ;;  %v695_v62 = vmul.f32 0.70710677, %v689_v60  ;;  %v181_v14 = vand.u32 2147483648, %v168_v59  ;;  %v179_v16 = vand.u32 2147483647, %v168_v59 }
 0x1b9   :  { %vm175_vm8 = vweird.f32 %v168_v59  ;;  %v222_v40 = vmul.f32 1.442695, %v220_v33  ;;  %v564_v33 = vmov 16  }
 0x1ba   :  { %v165_v4 = vand.u32 2147483647, %v695_v62  ;;  %v182_v19 = vor.u32 1.1754944e-38, %v181_v14  ;;  %vm180_vm10 = vcmp.eq.f32.partialorder %v179_v16, 8.507059e+37  ;;  %vm161_vm1 = vcmp.ge.f32.partialorder %v695_v62, 0.0  ;;  %509 = vset.pattern.permute.xlu2 %v564_v33 }
 0x1bb   :  { %v163_v14 = vsel %vm161_vm1, 1.0, %v562_v5  ;;  %v157_v16 = vmul.f32 0.5, %v689_v60 }
 0x1bc   :  { %v167_v6 = vmul.f32 0.3275911, %v165_v4  ;;  %v219_v41 = vsub.f32 0.0, %v165_v4 }
 0x1be   :  { %v519_v8 = vpop.eup %518  ;;  %v169_v9 = vadd.f32 1.0, %v167_v6  ;;  %v221_v47 = vmul.f32 %v219_v41, %v165_v4  ;;  %v162_v6 = vsel %vm160_vm15, 1.0, %v562_v5 }
 0x1bf   :  { %v171_v10 = vmul.f32 %v519_v8, %v168_v59  ;;  %vm176_vm7 = vweird.f32 %v519_v8 }
 0x1c0   :  { %520 = vrcp.f32 %v169_v9  ;;  %vm177_vm9 = vmor %vm175_vm8, %vm176_vm7  ;;  %v196_v27 = vand.u32 2147483648, %v169_v9  ;;  %v194_v31 = vand.u32 2147483647, %v169_v9  ;;  %vm190_vm12 = vweird.f32 %v169_v9 }
 0x1c1   :  { %v172_v12 = vsub.f32 1.0, %v171_v10  ;;  %522 = vpow2.f32 %v222_v40  ;;  %v224_v54 = vmul.f32 1.442695, %v221_v47 }
 0x1c2   :  { %v197_v36 = vor.u32 1.1754944e-38, %v196_v27  ;;  %vm195_vm14 = vcmp.eq.f32.partialorder %v194_v31, 8.507059e+37  ;;  %v22_v31 = vld [vmem:[%s763_s3 + $0x10] sm:$0xff] }
 0x1c3   :  { %v173_v15 = vmul.f32 %v519_v8, %v172_v12  ;;  %524 = vpow2.f32 %v224_v54  ;;  %356 = vperm.xlu2 %509, %v22_v31  }
 0x1c5   :  { %v174_v17 = vadd.f32 %v519_v8, %v173_v15 }
 0x1c6   :  { %v521_v18 = vpop.eup %520 }
 0x1c7   :  { %v186_v20 = vmul.f32 %v521_v18, %v169_v9  ;;  %v178_v22 = vsel %vm177_vm9, %v519_v8, %v174_v17  ;;  %vm191_vm11 = vweird.f32 %v521_v18  ;;  %v523_v57 = vpop.eup %522  ;;  %v156_v8 = vmul.f32 0.5, %v671_v50  ;;  %v513_v50 = vld [vmem:[%s763_s3 + $0x19] ss:$0 sm:$0xff]  ;;  %s566_s3 = smov [#allocation2]  }
 0x1c8   :  { %v183_v24 = vsel %vm180_vm10, %v182_v19, %v178_v22  ;;  %vm192_vm13 = vmor %vm190_vm12, %vm191_vm11  ;;  %s469_s9 = sshll.u32 %s566_s3, 4  ;;  %s470_s9 = int_to_ptr.vmem [resolvable:$true] %s469_s9 }
 0x1c9   :  { %v187_v25 = vsub.f32 1.0, %v186_v20  ;;  %v200_v26 = vmul.f32 1.0614054, %v183_v24  ;;  %v525_v11 = vpop.eup %524 }
 0x1cb   :  { %v202_v28 = vadd.f32 -1.4531521, %v200_v26  ;;  %v188_v30 = vmul.f32 %v521_v18, %v187_v25  ;;  %429 = vrot.lane.b32.xlu2 %v608_v2, %s563_s6 }
 0x1cd   :  { %v204_v34 = vmul.f32 %v202_v28, %v183_v24  ;;  %v189_v35 = vadd.f32 %v521_v18, %v188_v30 }
 0x1cf   :  { %v206_v37 = vadd.f32 1.4214138, %v204_v34  ;;  %v193_v38 = vsel %vm192_vm13, %v521_v18, %v189_v35  ;;  %vm433_vm13 = vcmask 64512  }
 0x1d0   :  { %v198_v42 = vsel %vm195_vm14, %v197_v36, %v193_v38 }
 0x1d1   :  { %v208_v43 = vmul.f32 %v206_v37, %v183_v24  ;;  %v201_v44 = vmul.f32 1.0614054, %v198_v42 }
 0x1d3   :  { %v210_v45 = vadd.f32 -0.28449672, %v208_v43  ;;  %v203_v46 = vadd.f32 -1.4531521, %v201_v44 }
 0x1d5   :  { %v212_v48 = vmul.f32 %v210_v45, %v183_v24  ;;  %v205_v49 = vmul.f32 %v203_v46, %v198_v42 }
 0x1d7   :  { %v214_v51 = vadd.f32 0.2548296, %v212_v48  ;;  %v207_v53 = vadd.f32 1.4214138, %v205_v49 }
 0x1d9   :  { %v216_v55 = vmul.f32 %v214_v51, %v183_v24  ;;  %v209_v56 = vmul.f32 %v207_v53, %v198_v42 }
 0x1db   :  { %v226_v58 = vmul.f32 %v523_v57, %v216_v55  ;;  %v211_v59 = vadd.f32 -0.28449672, %v209_v56 }
 0x1dd   :  { %v228_v61 = vsub.f32 1.0, %v226_v58  ;;  %v213_v63 = vmul.f32 %v211_v59, %v198_v42 }
 0x1df   :  { %v230_v7 = vmul.f32 %v228_v61, %v162_v6  ;;  %v215_v4 = vadd.f32 0.2548296, %v213_v63 }
 0x1e1   :  { %v232_v9 = vadd.f32 1.0, %v230_v7  ;;  %v217_v10 = vmul.f32 %v215_v4, %v198_v42 }
 0x1e3   :  { %v234_v12 = vmul.f32 %v232_v9, %v156_v8  ;;  %v227_v13 = vmul.f32 %v525_v11, %v217_v10 }
 0x1e5   :  { %269 = vmatmul.f32.vlgmr.msra.gmra.mxu3 %v234_v12  ;;  %v229_v52 = vsub.f32 1.0, %v227_v13 }
 0x1e7   :  { %v231_v15 = vmul.f32 %v229_v52, %v163_v14 }
 0x1e9   :  { %v233_v17 = vadd.f32 1.0, %v231_v15 }
 0x1eb   :  { %v235_v18 = vmul.f32 %v233_v17, %v157_v16 }
 0x1ed   :  { %272 = vmatmul.f32.gmra.mxu3 %v235_v18 }
 0x21d   :  { %v357_v59 = vpop.permute.xlu2 %356 }
 0x268   :  { %v270_v19 = vpop.f32.mrf.mxu3 }
 0x269   :  { %v271_v22 = vadd.f32 %v513_v50, %v270_v19 }
 0x26b   :  { %v726_v24 = vadd.f32 %v271_v22, %v602_v1 }
 0x270   :  { %v273_v20 = vpop.f32.mrf.mxu3 }
 0x271   :  { %v274_v62 = vadd.f32 %v513_v50, %v273_v20  ;;  %v565_v50 = vmov 26  }
 0x272   :  { %511 = vset.pattern.permute.xlu0 %v565_v50  ;;  %510 = vset.pattern.permute.xlu2 %v565_v50 }
 0x273   :  { %v723_v23 = vadd.f32 %v274_v62, %v597_v0  ;;  %426 = vperm.xlu0 %511, %v616_v3   ;;  %422 = vperm.xlu2 %510, %v608_v2  }
 0x275   :  { %292 = vmatpush.msrb.mxu0 %v723_v23 }
 0x277   :  { %293 = vmatpush.msrb.mxu0 %v726_v24 }
 0x278   :  { %489 = vmatmul.msk.f32.vlgmr.msrb.gmra.mxu0 %vm25_vm0, %v608_v2 }
 0x280   :  { %490 = vmatmul.msk.f32.gmra.mxu0 %vm25_vm0, %v616_v3 }
 0x2f5   :  { %v295_v60 = vpop.f32.mrf.mxu0 }
 0x2f6   :  { %v301_v26 = vsub.f32 %v726_v24, %v295_v60 }
 0x2f8   :  { %v303_v1 = vmul.f32 %v301_v26, %v301_v26 }
 0x2fd   :  { %v298_v25 = vpop.f32.mrf.mxu0 }
 0x2fe   :  { %v302_v0 = vsub.f32 %v723_v23, %v298_v25 }
 0x300   :  { %v304_v27 = vmul.f32 %v302_v0, %v302_v0 }
 0x302   :  { %319 = vmatpush.msrb.mxu1 %v304_v27 }
 0x304   :  { %320 = vmatpush.msrb.mxu1 %v303_v1 }
 0x305   :  { %491 = vmatmul.msk.f32.vlgmr.msrb.gmra.mxu1 %vm25_vm0, %v608_v2  ;;  %v432_v2 = vpop.permute.xlu1 %431 }
 0x30d   :  { %492 = vmatmul.msk.f32.gmra.mxu1 %vm25_vm0, %v616_v3 }
 0x382   :  { %v322_v28 = vpop.f32.mrf.mxu1 }
 0x383   :  { %v323_v30 = vadd.f32 1e-05, %v322_v28 }
 0x385   :  { %526 = vrsqrt.f32 %v323_v30  ;;  %vm334_vm3 = vweird.f32 %v323_v30 }
 0x38a   :  { %v325_v34 = vpop.f32.mrf.mxu1 }
 0x38b   :  { %v527_v35 = vpop.eup %526  ;;  %v326_v36 = vadd.f32 1e-05, %v325_v34 }
 0x38c   :  { %v329_v37 = vmul.f32 %v527_v35, %v323_v30  ;;  %vm335_vm2 = vweird.f32 %v527_v35 }
 0x38d   :  { %528 = vrsqrt.f32 %v326_v36  ;;  %vm336_vm4 = vmor %vm334_vm3, %vm335_vm2  ;;  %vm344_vm6 = vweird.f32 %v326_v36 }
 0x38e   :  { %v330_v38 = vmul.f32 %v527_v35, %v329_v37 }
 0x390   :  { %v331_v40 = vmul.f32 0.5, %v330_v38 }
 0x392   :  { %v332_v41 = vsub.f32 1.5, %v331_v40  ;;  %v427_v40 = vpop.permute.xlu0 %426 }
 0x393   :  { %v529_v42 = vpop.eup %528 }
 0x394   :  { %v339_v43 = vmul.f32 %v529_v42, %v326_v36  ;;  %v333_v44 = vmul.f32 %v527_v35, %v332_v41  ;;  %vm345_vm5 = vweird.f32 %v529_v42 }
 0x395   :  { %vm346_vm7 = vmor %vm344_vm6, %vm345_vm5 }
 0x396   :  { %v340_v45 = vmul.f32 %v529_v42, %v339_v43  ;;  %v337_v48 = vsel %vm336_vm4, %v527_v35, %v333_v44  ;;  %v430_v35 = vpop.permute.xlu2 %429 }
 0x397   :  { %v348_v51 = vmul.f32 %v337_v48, %v301_v26 }
 0x398   :  { %v341_v46 = vmul.f32 0.5, %v340_v45 }
 0x399   :  { %v350_v56 = vmul.f32 %v348_v51, %v636_v21 }
 0x39a   :  { %v342_v47 = vsub.f32 1.5, %v341_v46 }
 0x39b   :  { %v352_v58 = vadd.f32 %v350_v56, %v640_v32 }
 0x39c   :  { %v343_v49 = vmul.f32 %v529_v42, %v342_v47 }
 0x39e   :  { %v347_v53 = vsel %vm346_vm7, %v529_v42, %v343_v49  ;;  %v423_v3 = vpop.permute.xlu2 %422 }
 0x39f   :  { %v349_v54 = vmul.f32 %v347_v53, %v302_v0 }
 0x3a1   :  { %v351_v55 = vmul.f32 %v349_v54, %v638_v29 }
 0x3a3   :  { %v353_v57 = vadd.f32 %v351_v55, %v645_v39 }
 0x3a5   :  { %375 = vmatpush.msrb.mxu2 %v353_v57 }
 0x3a7   :  { %376 = vmatpush.msrb.mxu2 %v352_v58 }
 0x3a8   :  { %493 = vmatmul.msk.f32.vlgmr.msrb.gmra.mxu2 %vm25_vm0, %v22_v31 }
 0x42b   :  { %v378_v61 = vpop.f32.mrf.mxu2 }
 0x42c   :  { %v379_v63 = vadd.f32 %v378_v61, %v357_v59 }
 0x42e   :  { %v382_v6 = vmul.f32 0.70710677, %v379_v63  ;;  %v381_v31 = vmul.f32 0.5, %v379_v63 }
 0x430   :  { %v385_v7 = vand.u32 2147483647, %v382_v6  ;;  %vm383_vm12 = vcmp.ge.f32.partialorder %v382_v6, 0.0 }
 0x431   :  { %v384_v28 = vsel %vm383_vm12, 1.0, %v562_v5 }
 0x432   :  { %v386_v4 = vmul.f32 0.3275911, %v385_v7  ;;  %v412_v14 = vsub.f32 0.0, %v385_v7 }
 0x434   :  { %v387_v8 = vadd.f32 1.0, %v386_v4  ;;  %v413_v17 = vmul.f32 %v412_v14, %v385_v7 }
 0x436   :  { %530 = vrcp.f32 %v387_v8  ;;  %v399_v21 = vand.u32 2147483648, %v387_v8  ;;  %v397_v39 = vand.u32 2147483647, %v387_v8  ;;  %vm393_vm9 = vweird.f32 %v387_v8 }
 0x437   :  { %v414_v20 = vmul.f32 1.442695, %v413_v17 }
 0x438   :  { %v400_v32 = vor.u32 1.1754944e-38, %v399_v21  ;;  %vm398_vm11 = vcmp.eq.f32.partialorder %v397_v39, 8.507059e+37 }
 0x439   :  { %532 = vpow2.f32 %v414_v20 }
 0x43c   :  { %v531_v9 = vpop.eup %530 }
 0x43d   :  { %v389_v29 = vmul.f32 %v531_v9, %v387_v8  ;;  %vm394_vm8 = vweird.f32 %v531_v9 }
 0x43e   :  { %vm395_vm10 = vmor %vm393_vm9, %vm394_vm8 }
 0x43f   :  { %v390_v10 = vsub.f32 1.0, %v389_v29  ;;  %v533_v0 = vpop.eup %532 }
 0x441   :  { %v391_v11 = vmul.f32 %v531_v9, %v390_v10 }
 0x443   :  { %v392_v12 = vadd.f32 %v531_v9, %v391_v11 }
 0x445   :  { %v396_v13 = vsel %vm395_vm10, %v531_v9, %v392_v12 }
 0x446   :  { %v401_v52 = vsel %vm398_vm11, %v400_v32, %v396_v13 }
 0x447   :  { %v403_v15 = vmul.f32 1.0614054, %v401_v52 }
 0x449   :  { %v404_v16 = vadd.f32 -1.4531521, %v403_v15 }
 0x44b   :  { %v405_v18 = vmul.f32 %v404_v16, %v401_v52 }
 0x44d   :  { %v406_v19 = vadd.f32 1.4214138, %v405_v18 }
 0x44f   :  { %v407_v22 = vmul.f32 %v406_v19, %v401_v52 }
 0x451   :  { %v408_v62 = vadd.f32 -0.28449672, %v407_v22 }
 0x453   :  { %v409_v60 = vmul.f32 %v408_v62, %v401_v52 }
 0x455   :  { %v410_v25 = vadd.f32 0.2548296, %v409_v60 }
 0x457   :  { %v411_v26 = vmul.f32 %v410_v25, %v401_v52 }
 0x459   :  { %v416_v27 = vmul.f32 %v533_v0, %v411_v26 }
 0x45b   :  { %v417_v1 = vsub.f32 1.0, %v416_v27 }
 0x45d   :  { %v418_v30 = vmul.f32 %v417_v1, %v384_v28 }
 0x45f   :  { %v419_v33 = vadd.f32 1.0, %v418_v30 }
 0x461   :  { %v420_v34 = vmul.f32 %v419_v33, %v381_v31 }
 0x463   :  { %453 = vmatpush.msra.mxu2 %v420_v34 }
 0x464   :  { %494 = vmatmul.msk.f32.vlgmr.msra.gmra.mxu2 %vm433_vm13, %v430_v35 }
 0x46c   :  { %495 = vmatmul.msk.f32.gmra.mxu2 %vm433_vm13, %v432_v2 }
 0x4e7   :  { %v455_v36 = vpop.f32.mrf.mxu2 }
 0x4e8   :  { %v456_v37 = vadd.f32 %v455_v36, %v423_v3 }
 0x4ea   :  { %v461_v38 = vadd.f32 %v456_v37, %v726_v24 }
 0x4ec   :  { %463 = vst.msk [vmem:[#allocation2] sm:$0xff] %vm25_vm0, %v461_v38 }
 0x4ef   :  { %v458_v5 = vpop.f32.mrf.mxu2 }
 0x4f0   :  { %v459_v41 = vadd.f32 %v458_v5, %v427_v40 }
 0x4f2   :  { %v462_v42 = vadd.f32 %v459_v41, %v723_v23 }
 0x4f4   :  { %464 = vst.msk [vmem:[#allocation2 + $0x8] sm:$0xff] %vm25_vm0, %v462_v42 }
 0x4f5   :  { %477 = dma.vmem_to_hbm [thread:$0]  %s470_s9, 256, %s472_s12, [#allocation3], %s567_s13, %s567_s13, %s568_s14  }
 0x4f6   :  { %558 = dma.done.wait [#allocation3], 256  }
 0x4f7   :  { %559 = vsyncadd [#allocation3], 4294967040 }
 0x4f8   :  { %482 = vsyncpa [#allocation3], 1 }

</bundles_post_ra>
